<compile_context>
chip_gen: v7x
topology: tpu7x:2x2x1
jax: 0.10.0
libtpu: 0.0.40
codegen_flags: <defaults>
</compile_context>

<pallas_src>
import functools
import math

import jax
import jax.numpy as jnp
from jax import lax
from jax.experimental import pallas as pl
from jax.experimental.pallas import tpu as pltpu

EPS = 1e-5                # torch.nn.LayerNorm default
LANE = 128                # lane width (last-dim alignment)
_MIB = 1 << 20


def _round_up(x, m):
    return (x + m - 1) // m * m


def _pad2d(a, rows, cols):
    return jnp.pad(a, ((0, rows - a.shape[0]), (0, cols - a.shape[1])))


def _sublane(dtype):
    # native sublane packing: f32 -> 8 rows, bf16 -> 16, int8/fp8 -> 32
    return max(8, 32 // jnp.dtype(dtype).itemsize)


def _vmem_capacity_bytes():
    try:
        return int(pltpu.get_tpu_info().vmem_capacity_bytes)
    except Exception:
        return 64 * _MIB  # conservative (v7x per-TensorCore VMEM)


def _buffered_supported():
    try:
        pl.BlockSpec((8, LANE), lambda i: (0, 0), pipeline_mode=pl.Buffered(1))
        return True
    except Exception:
        return False


_SINGLE_BUF_OK = _buffered_supported()
_PARAM_BUF_FACTOR = 1 if _SINGLE_BUF_OK else 2


def _param_spec(shape, index_map):
    """BlockSpec for grid-invariant parameters: single-buffered when supported."""
    if _SINGLE_BUF_OK:
        return pl.BlockSpec(shape, index_map, pipeline_mode=pl.Buffered(1))
    return pl.BlockSpec(shape, index_map)


def _layernorm_gelu(y, gamma, beta, d_real, d_pad, apply_gelu, approx_gelu):
    """Centered (two-pass) LayerNorm over the real feature count + optional GELU (f32)."""
    inv_d = 1.0 / float(d_real)
    mean = jnp.sum(y, axis=-1, keepdims=True) * inv_d      # padded cols are exactly 0
    yc = y - mean
    s2 = jnp.sum(yc * yc, axis=-1, keepdims=True)
    if d_pad != d_real:
        # each padded (zero) column contributes mean^2 to the centered second moment;
        # subtract that exactly so the statistics cover only the real features.
        s2 = s2 - float(d_pad - d_real) * (mean * mean)
    var = jnp.maximum(s2 * inv_d, 0.0)
    y = yc * lax.rsqrt(var + EPS)                           # rsqrt -> EUP slot
    y = y * gamma + beta                                    # padded gamma/beta = 0 -> cols stay 0
    if apply_gelu:
        if approx_gelu:
            # tanh-approximate GELU (EUP tanh, frees VALU) -- opt-in, not bit-equal to erf GELU
            c = math.sqrt(2.0 / math.pi)
            y = 0.5 * y * (1.0 + jnp.tanh(c * (y + 0.044715 * y * y * y)))
        else:
            # exact (erf) GELU, matching F.gelu(approximate='none')
            y = 0.5 * y * (1.0 + lax.erf(y * (1.0 / math.sqrt(2.0))))
    return y


# ---------------------------------------------------------------------------
# Path 1: a group of consecutive layers fused into one kernel
#         (weights resident in VMEM, activations never touch HBM inside a group).
# ---------------------------------------------------------------------------
def _fused_group_kernel(*refs, num_layers, real_out, pad_out, gelu_flags, approx_gelu):
    x_ref = refs[0]
    o_ref = refs[-1]
    h = x_ref[...]                                           # native dtype -> MXU fast path
    for li in range(num_layers):
        w_ref, b_ref, g_ref, bt_ref = refs[1 + 4 * li: 5 + 4 * li]
        y = jnp.dot(h, w_ref[...], preferred_element_type=jnp.float32)
        y = y + b_ref[...].astype(jnp.float32)
        y = _layernorm_gelu(
            y,
            g_ref[...].astype(jnp.float32),
            bt_ref[...].astype(jnp.float32),
            real_out[li], pad_out[li],
            apply_gelu=gelu_flags[li],
            approx_gelu=approx_gelu,
        )
        h = y if li == num_layers - 1 else y.astype(w_ref.dtype)
    o_ref[...] = h.astype(o_ref.dtype)


def _fused_group_call(x_p, padded_params, real_out, gelu_flags, approx_gelu,
                      tile_n, out_dtype, vmem_limit):
    n_p, d0_p = x_p.shape
    nl = len(padded_params)
    d_last_p = padded_params[-1][0].shape[1]

    in_specs = [pl.BlockSpec((tile_n, d0_p), lambda i: (i, 0))]
    flat = [x_p]
    pad_out = []
    for (w, b, g, bt) in padded_params:
        din_p, dout_p = w.shape
        pad_out.append(dout_p)
        pm = lambda i: (0, 0)
        in_specs += [
            _param_spec((din_p, dout_p), pm),
            _param_spec((1, dout_p), pm),
            _param_spec((1, dout_p), pm),
            _param_spec((1, dout_p), pm),
        ]
        flat += [w, b, g, bt]

    kernel = functools.partial(
        _fused_group_kernel, num_layers=nl,
        real_out=tuple(real_out), pad_out=tuple(pad_out),
        gelu_flags=tuple(gelu_flags), approx_gelu=approx_gelu)

    return pl.pallas_call(
        kernel,
        out_shape=jax.ShapeDtypeStruct((n_p, d_last_p), out_dtype),
        grid_spec=pltpu.PrefetchScalarGridSpec(
            num_scalar_prefetch=0,
            grid=(n_p // tile_n,),
            in_specs=in_specs,
            out_specs=pl.BlockSpec((tile_n, d_last_p), lambda i: (i, 0)),
        ),
        compiler_params=pltpu.CompilerParams(
            dimension_semantics=("parallel",),
            vmem_limit_bytes=vmem_limit,
        ),
    )(*flat)


# ---------------------------------------------------------------------------
# Path 2: one layer, row + K tiled, f32 accumulator, pl.when init/finalize.
# ---------------------------------------------------------------------------
def _layer_ktiled_kernel(x_ref, w_ref, b_ref, g_ref, bt_ref, o_ref, acc_ref, *,
                         apply_gelu, approx_gelu, d_real, d_pad):
    k = pl.program_id(1)

    @pl.when(k == 0)
    def _():
        acc_ref[...] = jnp.zeros_like(acc_ref)

    acc_ref[...] += jnp.dot(x_ref[...], w_ref[...], preferred_element_type=jnp.float32)

    @pl.when(k == pl.num_programs(1) - 1)
    def _():
        y = acc_ref[...] + b_ref[...].astype(jnp.float32)
        y = _layernorm_gelu(
            y,
            g_ref[...].astype(jnp.float32),
            bt_ref[...].astype(jnp.float32),
            d_real, d_pad,
            apply_gelu=apply_gelu,
            approx_gelu=approx_gelu,
        )
        o_ref[...] = y.astype(o_ref.dtype)


def _layer_ktiled_call(x_p, w_p, b_p, g_p, bt_p, *, apply_gelu, approx_gelu, d_real,
                       tile_n, tile_k, out_dtype, vmem_limit):
    n_p, din_p = x_p.shape
    dout_p = w_p.shape[1]
    kernel = functools.partial(
        _layer_ktiled_kernel, apply_gelu=apply_gelu, approx_gelu=approx_gelu,
        d_real=d_real, d_pad=dout_p)
    return pl.pallas_call(
        kernel,
        out_shape=jax.ShapeDtypeStruct((n_p, dout_p), out_dtype),
        grid_spec=pltpu.PrefetchScalarGridSpec(
            num_scalar_prefetch=0,
            grid=(n_p // tile_n, din_p // tile_k),
            in_specs=[
                pl.BlockSpec((tile_n, tile_k), lambda i, k: (i, k)),
                pl.BlockSpec((tile_k, dout_p), lambda i, k: (k, 0)),
                _param_spec((1, dout_p), lambda i, k: (0, 0)),
                _param_spec((1, dout_p), lambda i, k: (0, 0)),
                _param_spec((1, dout_p), lambda i, k: (0, 0)),
            ],
            out_specs=pl.BlockSpec((tile_n, dout_p), lambda i, k: (i, 0)),
            scratch_shapes=[pltpu.VMEM((tile_n, dout_p), jnp.float32)],
        ),
        compiler_params=pltpu.CompilerParams(
            dimension_semantics=("parallel", "arbitrary"),
            vmem_limit_bytes=vmem_limit,
        ),
    )(x_p, w_p, b_p, g_p, bt_p)


# ---------------------------------------------------------------------------
# Wrapper: padding, generation-aware tile/VMEM sizing, partial-fusion grouping.
# ---------------------------------------------------------------------------
def mlpv2_forward(x, params, *, compute_dtype=None, approx_gelu=False,
                  tile_n=None, tile_k=None, max_fuse_layers=None, force_ktiled=False):
    """x: [..., input_dim] -> [..., output_dim] (matches MLPv2.forward)."""
    lead = x.shape[:-1]
    n = math.prod(lead) if lead else 1
    num_layers = len(params)
    real_in = [w.shape[0] for (w, _, _, _) in params]
    real_out = [w.shape[1] for (w, _, _, _) in params]
    assert x.shape[-1] == real_in[0]

    work_dtype = jnp.dtype(compute_dtype) if compute_dtype is not None else jnp.dtype(x.dtype)
    out_dtype = x.dtype
    sub = _sublane(work_dtype)
    act_dt = work_dtype.itemsize
    par_dt = work_dtype.itemsize  # weights are cast to the compute dtype

    pad_in = [_round_up(d, LANE) for d in real_in]
    pad_out = [_round_up(d, LANE) for d in real_out]
    gelu_all = [i < num_layers - 1 for i in range(num_layers)]

    cap = _vmem_capacity_bytes()
    budget = max(cap - 16 * _MIB, 32 * _MIB)     # headroom below physical VMEM (v7x: 48 MiB)
    default_tile_n = 512 if cap >= 128 * _MIB else 256
    default_tile_k = 1024 if cap >= 128 * _MIB else 512

    # --- row tile selection (generation-aware, megacore-friendly) ---
    user_tile_n = tile_n is not None
    if not user_tile_n:
        if n >= 2 * default_tile_n:
            tile_n = default_tile_n
        else:
            # Small batch: split rows across (at most) two grid steps so the v7x
            # "parallel" axis can feed both TensorCores; round to the dtype sublane.
            half = -(-n // 2) if n > sub else n
            tile_n = _round_up(half, sub)
    else:
        tile_n = _round_up(tile_n, sub)

    # --- VMEM estimators (params counted with their actual buffer factor) ---
    def group_fused_est(tn, lo, hi):
        max_pad = max([pad_in[lo]] + pad_out[lo:hi])
        pbytes = sum((pad_in[i] * pad_out[i]) * par_dt + 3 * pad_out[i] * 4
                     for i in range(lo, hi)) * _PARAM_BUF_FACTOR
        return (2 * tn * pad_in[lo] * act_dt         # double-buffered input tile
                + pbytes                              # resident parameters
                + 2 * tn * pad_out[hi - 1] * act_dt  # double-buffered output tile
                + 3 * tn * max_pad * 4               # f32 intermediates / temporaries
                + 2 * _MIB)                          # Mosaic internal scratch margin

    def layer_ktiled_est(tn, tk, dout_p_l):
        return (2 * tn * tk * act_dt
                + 2 * tk * dout_p_l * par_dt                      # K-slab of W, double-buffered
                + _PARAM_BUF_FACTOR * 3 * dout_p_l * 4            # b, gamma, beta
                + tn * dout_p_l * 4                                # f32 accumulator scratch
                + 2 * tn * dout_p_l * act_dt                       # double-buffered output tile
                + 2 * _MIB)

    # Shrink tile_n (down to 128) before abandoning the fully fused path.
    if not force_ktiled and not user_tile_n:
        floor_tn = max(128, sub)
        while tile_n > floor_tn and group_fused_est(tile_n, 0, num_layers) > budget:
            new_tn = max(floor_tn, tile_n // 2)
            if new_tn == tile_n:
                break
            tile_n = new_tn

    n_p = _round_up(n, tile_n)

    # --- pad & cast operands ---
    h_p = _pad2d(x.reshape(n, real_in[0]).astype(work_dtype), n_p, pad_in[0])
    padded = [
        (_pad2d(w.astype(work_dtype), pad_in[i], pad_out[i]),
         _pad2d(b, 1, pad_out[i]),
         _pad2d(g, 1, pad_out[i]),
         _pad2d(bt, 1, pad_out[i]))
        for i, (w, b, g, bt) in enumerate(params)
    ]

    # --- partial-fusion grouping ---
    groups = []  # ("fused", lo, hi) | ("ktiled", li)
    if force_ktiled:
        groups = [("ktiled", i) for i in range(num_layers)]
    else:
        li = 0
        while li < num_layers:
            if group_fused_est(tile_n, li, li + 1) > budget:
                groups.append(("ktiled", li))
                li += 1
                continue
            limit = num_layers if max_fuse_layers is None else min(num_layers, li + max_fuse_layers)
            hi = li + 1
            while hi < limit and group_fused_est(tile_n, li, hi + 1) <= budget:
                hi += 1
            groups.append(("fused", li, hi))
            li = hi

    # --- execute groups ---
    for grp in groups:
        if grp[0] == "fused":
            _, lo, hi = grp
            est = group_fused_est(tile_n, lo, hi)
            vmem_limit = int(min(budget, max(est + 4 * _MIB, 32 * _MIB)))
            h_p = _fused_group_call(
                h_p, padded[lo:hi], real_out[lo:hi], gelu_all[lo:hi], approx_gelu,
                tile_n, work_dtype, vmem_limit)
        else:
            _, i = grp
            w_p, b_p, g_p, bt_p = padded[i]
            din_p_l, dout_p_l = pad_in[i], pad_out[i]
            cands = [t for t in range(din_p_l, 0, -LANE) if din_p_l % t == 0]  # desc, mult of 128
            tk0 = min(tile_k if tile_k is not None else default_tile_k, din_p_l)
            tk = next((t for t in cands if t <= tk0), cands[-1])
            tn_l = tile_n
            # budget-aware tiling: shrink K, then rows, instead of clamping the limit
            while layer_ktiled_est(tn_l, tk, dout_p_l) > budget:
                smaller = [t for t in cands if t < tk]
                if smaller:
                    tk = smaller[0]
                elif (tn_l // 2 >= sub and (tn_l // 2) % sub == 0
                      and n_p % (tn_l // 2) == 0):
                    tn_l //= 2
                else:
                    # TODO(synk): add a dout (N) grid axis with a split LayerNorm epilogue
                    # for layers too wide to fit even at minimal (tile_n, tile_k).
                    break
            est = layer_ktiled_est(tn_l, tk, dout_p_l)
            vmem_limit = int(min(budget, max(est + 4 * _MIB, 32 * _MIB)))
            h_p = _layer_ktiled_call(
                h_p, w_p, b_p, g_p, bt_p,
                apply_gelu=gelu_all[i], approx_gelu=approx_gelu, d_real=real_out[i],
                tile_n=tn_l, tile_k=tk, out_dtype=work_dtype, vmem_limit=vmem_limit)

    out = h_p[:n, :real_out[-1]].astype(out_dtype)
    return out.reshape(*lead, real_out[-1])


# ---------------------------------------------------------------------------
# Params + pure-JAX reference.
# ---------------------------------------------------------------------------
def init_mlpv2_params(key, input_dim, hidden_dim, output_dim, num_layers):
    """Deterministic synthetic params; Linear weights stored as [in, out]."""
    h = [hidden_dim] * (num_layers - 1)
    dims = list(zip([input_dim] + h, h + [output_dim]))
    params = []
    for (n_in, n_out) in dims:
        key, kw, kb = jax.random.split(key, 3)
        bound = 1.0 / math.sqrt(n_in)  # torch.nn.Linear default init range
        w = jax.random.uniform(kw, (n_in, n_out), jnp.float32, -bound, bound)
        b = jax.random.uniform(kb, (1, n_out), jnp.float32, -bound, bound)
        gamma = jnp.ones((1, n_out), jnp.float32)   # LayerNorm weight init
        beta = jnp.zeros((1, n_out), jnp.float32)   # LayerNorm bias init
        params.append((w, b, gamma, beta))
    return params


def _reference_forward(x, params):
    num_layers = len(params)
    h = x
    for i, (w, b, g, beta) in enumerate(params):
        y = h @ w + b[0]
        mean = jnp.mean(y, axis=-1, keepdims=True)
        var = jnp.mean((y - mean) ** 2, axis=-1, keepdims=True)
        y = (y - mean) * lax.rsqrt(var + EPS)
        y = y * g[0] + beta[0]
        if i < num_layers - 1:
            y = 0.5 * y * (1.0 + lax.erf(y / math.sqrt(2.0)))
        h = y
    return h


if __name__ == "__main__":
    # Shapes consistent with the module: x of shape [batch, seq, input_dim]
    batch, seq = 2, 8
    input_dim, hidden_dim, output_dim, num_layers = 16, 32, 8, 3

    key = jax.random.PRNGKey(0)
    kx, kp = jax.random.split(key)
    x = jax.random.normal(kx, (batch, seq, input_dim), jnp.float32)
    params = init_mlpv2_params(kp, input_dim, hidden_dim, output_dim, num_layers)
    ref = _reference_forward(x, params)

    # Path 1: fully fused (all layers in one pallas_call, VMEM-resident single-buffered params).
    out = jax.block_until_ready(mlpv2_forward(x, params))
    assert out.shape == (batch, seq, output_dim)
    assert jnp.allclose(out, ref, atol=5e-4, rtol=5e-4)

    # Partial fusion: layers grouped two-at-a-time (exercises the grouping machinery).
    out_g = jax.block_until_ready(mlpv2_forward(x, params, max_fuse_layers=2))
    assert jnp.allclose(out_g, ref, atol=5e-4, rtol=5e-4)

    # Path 2: per-layer kernel with K-tiling + f32 accumulator (wider input so the
    # contraction axis spans multiple grid steps and exercises pl.when init/finalize).
    input_dim2 = 256
    kx2, kp2 = jax.random.split(jax.random.PRNGKey(1))
    x2 = jax.random.normal(kx2, (batch, seq, input_dim2), jnp.float32)
    params2 = init_mlpv2_params(kp2, input_dim2, hidden_dim, output_dim, num_layers)
    out2 = jax.block_until_ready(
        mlpv2_forward(x2, params2, force_ktiled=True, tile_k=128))
    ref2 = _reference_forward(x2, params2)
    assert out2.shape == (batch, seq, output_dim)
    assert jnp.allclose(out2, ref2, atol=5e-4, rtol=5e-4)

    print("KERNEL_OK")
</pallas_src>

<mosaic_0001>
module attributes {stable_mosaic.version = 11 : i64} {
  func.func @_fused_group_kernel(%arg0: i32, %arg1: memref<8x128xf32, #tpu.memory_space<vmem>>, %arg2: memref<128x128xf32, #tpu.memory_space<vmem>>, %arg3: memref<1x128xf32, #tpu.memory_space<vmem>>, %arg4: memref<1x128xf32, #tpu.memory_space<vmem>>, %arg5: memref<1x128xf32, #tpu.memory_space<vmem>>, %arg6: memref<128x128xf32, #tpu.memory_space<vmem>>, %arg7: memref<1x128xf32, #tpu.memory_space<vmem>>, %arg8: memref<1x128xf32, #tpu.memory_space<vmem>>, %arg9: memref<1x128xf32, #tpu.memory_space<vmem>>, %arg10: memref<128x128xf32, #tpu.memory_space<vmem>>, %arg11: memref<1x128xf32, #tpu.memory_space<vmem>>, %arg12: memref<1x128xf32, #tpu.memory_space<vmem>>, %arg13: memref<1x128xf32, #tpu.memory_space<vmem>>, %arg14: memref<8x128xf32, #tpu.memory_space<vmem>>) attributes {dimension_semantics = [#tpu.dimension_semantics<parallel>], iteration_bounds = array<i64: 2>, scalar_prefetch = 0 : i64, scratch_operands = 0 : i64, tpu.core_type = #tpu.core_type<tc>, window_params = [{transform_indices = @transform_0, window_bounds = array<i64: 8, 128>}, {pipeline_mode = #tpu.pipeline_mode<synchronous>, transform_indices = @transform_1, window_bounds = array<i64: 128, 128>}, {pipeline_mode = #tpu.pipeline_mode<synchronous>, transform_indices = @transform_2, window_bounds = array<i64: 1, 128>}, {pipeline_mode = #tpu.pipeline_mode<synchronous>, transform_indices = @transform_3, window_bounds = array<i64: 1, 128>}, {pipeline_mode = #tpu.pipeline_mode<synchronous>, transform_indices = @transform_4, window_bounds = array<i64: 1, 128>}, {pipeline_mode = #tpu.pipeline_mode<synchronous>, transform_indices = @transform_5, window_bounds = array<i64: 128, 128>}, {pipeline_mode = #tpu.pipeline_mode<synchronous>, transform_indices = @transform_6, window_bounds = array<i64: 1, 128>}, {pipeline_mode = #tpu.pipeline_mode<synchronous>, transform_indices = @transform_7, window_bounds = array<i64: 1, 128>}, {pipeline_mode = #tpu.pipeline_mode<synchronous>, transform_indices = @transform_8, window_bounds = array<i64: 1, 128>}, {pipeline_mode = #tpu.pipeline_mode<synchronous>, transform_indices = @transform_9, window_bounds = array<i64: 128, 128>}, {pipeline_mode = #tpu.pipeline_mode<synchronous>, transform_indices = @transform_10, window_bounds = array<i64: 1, 128>}, {pipeline_mode = #tpu.pipeline_mode<synchronous>, transform_indices = @transform_11, window_bounds = array<i64: 1, 128>}, {pipeline_mode = #tpu.pipeline_mode<synchronous>, transform_indices = @transform_12, window_bounds = array<i64: 1, 128>}, {transform_indices = @transform_13, window_bounds = array<i64: 8, 128>}]} {
    %c0 = arith.constant 0 : index
    %c0_0 = arith.constant 0 : index
    %0 = vector.load %arg1[%c0, %c0_0] : memref<8x128xf32, #tpu.memory_space<vmem>>, vector<8x128xf32>
    %c0_1 = arith.constant 0 : index
    %c0_2 = arith.constant 0 : index
    %1 = vector.load %arg2[%c0_1, %c0_2] : memref<128x128xf32, #tpu.memory_space<vmem>>, vector<128x128xf32>
    %cst = arith.constant dense<0.000000e+00> : vector<8x128xf32>
    %2 = tpu.matmul %0, %1, %cst {dimension_numbers = #tpu.dot_dimension_numbers<[1], [0], [0], [1], [0, 0, 1, 1], [], []>} : vector<8x128xf32>, vector<128x128xf32>, vector<8x128xf32> -> vector<8x128xf32>
    %c0_3 = arith.constant 0 : index
    %c0_4 = arith.constant 0 : index
    %3 = vector.load %arg3[%c0_3, %c0_4] : memref<1x128xf32, #tpu.memory_space<vmem>>, vector<1x128xf32>
    %4 = vector.broadcast %3 : vector<1x128xf32> to vector<8x128xf32>
    %5 = arith.addf %2, %4 : vector<8x128xf32>
    %c0_5 = arith.constant 0 : index
    %c0_6 = arith.constant 0 : index
    %6 = vector.load %arg4[%c0_5, %c0_6] : memref<1x128xf32, #tpu.memory_space<vmem>>, vector<1x128xf32>
    %c0_7 = arith.constant 0 : index
    %c0_8 = arith.constant 0 : index
    %7 = vector.load %arg5[%c0_7, %c0_8] : memref<1x128xf32, #tpu.memory_space<vmem>>, vector<1x128xf32>
    %cst_9 = arith.constant dense<0.000000e+00> : vector<8xf32>
    %8 = vector.multi_reduction <add>, %5, %cst_9 [1] : vector<8x128xf32> to vector<8xf32>
    %9 = vector.shape_cast %8 : vector<8xf32> to vector<8x1xf32>
    %cst_10 = arith.constant 3.125000e-02 : f32
    %10 = vector.broadcast %cst_10 : f32 to vector<8x1xf32>
    %11 = arith.mulf %9, %10 : vector<8x1xf32>
    %12 = vector.broadcast %11 : vector<8x1xf32> to vector<8x128xf32>
    %13 = arith.subf %5, %12 : vector<8x128xf32>
    %14 = arith.mulf %13, %13 : vector<8x128xf32>
    %cst_11 = arith.constant dense<0.000000e+00> : vector<8xf32>
    %15 = vector.multi_reduction <add>, %14, %cst_11 [1] : vector<8x128xf32> to vector<8xf32>
    %16 = vector.shape_cast %15 : vector<8xf32> to vector<8x1xf32>
    %17 = arith.mulf %11, %11 : vector<8x1xf32>
    %cst_12 = arith.constant 9.600000e+01 : f32
    %18 = vector.broadcast %cst_12 : f32 to vector<8x1xf32>
    %19 = arith.mulf %18, %17 : vector<8x1xf32>
    %20 = arith.subf %16, %19 : vector<8x1xf32>
    %cst_13 = arith.constant 3.125000e-02 : f32
    %21 = vector.broadcast %cst_13 : f32 to vector<8x1xf32>
    %22 = arith.mulf %20, %21 : vector<8x1xf32>
    %cst_14 = arith.constant 0.000000e+00 : f32
    %23 = vector.broadcast %cst_14 : f32 to vector<8x1xf32>
    %24 = arith.maximumf %22, %23 : vector<8x1xf32>
    %cst_15 = arith.constant 9.99999974E-6 : f32
    %25 = vector.broadcast %cst_15 : f32 to vector<8x1xf32>
    %26 = arith.addf %24, %25 : vector<8x1xf32>
    %27 = math.rsqrt %26 : vector<8x1xf32>
    %28 = vector.broadcast %27 : vector<8x1xf32> to vector<8x128xf32>
    %29 = arith.mulf %13, %28 : vector<8x128xf32>
    %30 = vector.broadcast %6 : vector<1x128xf32> to vector<8x128xf32>
    %31 = arith.mulf %29, %30 : vector<8x128xf32>
    %32 = vector.broadcast %7 : vector<1x128xf32> to vector<8x128xf32>
    %33 = arith.addf %31, %32 : vector<8x128xf32>
    %cst_16 = arith.constant 5.000000e-01 : f32
    %34 = vector.broadcast %cst_16 : f32 to vector<8x128xf32>
    %35 = arith.mulf %34, %33 : vector<8x128xf32>
    %cst_17 = arith.constant 0.707106769 : f32
    %36 = vector.broadcast %cst_17 : f32 to vector<8x128xf32>
    %37 = arith.mulf %33, %36 : vector<8x128xf32>
    %38 = math.erf %37 : vector<8x128xf32>
    %cst_18 = arith.constant 1.000000e+00 : f32
    %39 = vector.broadcast %cst_18 : f32 to vector<8x128xf32>
    %40 = arith.addf %39, %38 : vector<8x128xf32>
    %41 = arith.mulf %35, %40 : vector<8x128xf32>
    %c0_19 = arith.constant 0 : index
    %c0_20 = arith.constant 0 : index
    %42 = vector.load %arg6[%c0_19, %c0_20] : memref<128x128xf32, #tpu.memory_space<vmem>>, vector<128x128xf32>
    %cst_21 = arith.constant dense<0.000000e+00> : vector<8x128xf32>
    %43 = tpu.matmul %41, %42, %cst_21 {dimension_numbers = #tpu.dot_dimension_numbers<[1], [0], [0], [1], [0, 0, 1, 1], [], []>} : vector<8x128xf32>, vector<128x128xf32>, vector<8x128xf32> -> vector<8x128xf32>
    %c0_22 = arith.constant 0 : index
    %c0_23 = arith.constant 0 : index
    %44 = vector.load %arg7[%c0_22, %c0_23] : memref<1x128xf32, #tpu.memory_space<vmem>>, vector<1x128xf32>
    %45 = vector.broadcast %44 : vector<1x128xf32> to vector<8x128xf32>
    %46 = arith.addf %43, %45 : vector<8x128xf32>
    %c0_24 = arith.constant 0 : index
    %c0_25 = arith.constant 0 : index
    %47 = vector.load %arg8[%c0_24, %c0_25] : memref<1x128xf32, #tpu.memory_space<vmem>>, vector<1x128xf32>
    %c0_26 = arith.constant 0 : index
    %c0_27 = arith.constant 0 : index
    %48 = vector.load %arg9[%c0_26, %c0_27] : memref<1x128xf32, #tpu.memory_space<vmem>>, vector<1x128xf32>
    %cst_28 = arith.constant dense<0.000000e+00> : vector<8xf32>
    %49 = vector.multi_reduction <add>, %46, %cst_28 [1] : vector<8x128xf32> to vector<8xf32>
    %50 = vector.shape_cast %49 : vector<8xf32> to vector<8x1xf32>
    %cst_29 = arith.constant 3.125000e-02 : f32
    %51 = vector.broadcast %cst_29 : f32 to vector<8x1xf32>
    %52 = arith.mulf %50, %51 : vector<8x1xf32>
    %53 = vector.broadcast %52 : vector<8x1xf32> to vector<8x128xf32>
    %54 = arith.subf %46, %53 : vector<8x128xf32>
    %55 = arith.mulf %54, %54 : vector<8x128xf32>
    %cst_30 = arith.constant dense<0.000000e+00> : vector<8xf32>
    %56 = vector.multi_reduction <add>, %55, %cst_30 [1] : vector<8x128xf32> to vector<8xf32>
    %57 = vector.shape_cast %56 : vector<8xf32> to vector<8x1xf32>
    %58 = arith.mulf %52, %52 : vector<8x1xf32>
    %cst_31 = arith.constant 9.600000e+01 : f32
    %59 = vector.broadcast %cst_31 : f32 to vector<8x1xf32>
    %60 = arith.mulf %59, %58 : vector<8x1xf32>
    %61 = arith.subf %57, %60 : vector<8x1xf32>
    %cst_32 = arith.constant 3.125000e-02 : f32
    %62 = vector.broadcast %cst_32 : f32 to vector<8x1xf32>
    %63 = arith.mulf %61, %62 : vector<8x1xf32>
    %cst_33 = arith.constant 0.000000e+00 : f32
    %64 = vector.broadcast %cst_33 : f32 to vector<8x1xf32>
    %65 = arith.maximumf %63, %64 : vector<8x1xf32>
    %cst_34 = arith.constant 9.99999974E-6 : f32
    %66 = vector.broadcast %cst_34 : f32 to vector<8x1xf32>
    %67 = arith.addf %65, %66 : vector<8x1xf32>
    %68 = math.rsqrt %67 : vector<8x1xf32>
    %69 = vector.broadcast %68 : vector<8x1xf32> to vector<8x128xf32>
    %70 = arith.mulf %54, %69 : vector<8x128xf32>
    %71 = vector.broadcast %47 : vector<1x128xf32> to vector<8x128xf32>
    %72 = arith.mulf %70, %71 : vector<8x128xf32>
    %73 = vector.broadcast %48 : vector<1x128xf32> to vector<8x128xf32>
    %74 = arith.addf %72, %73 : vector<8x128xf32>
    %cst_35 = arith.constant 5.000000e-01 : f32
    %75 = vector.broadcast %cst_35 : f32 to vector<8x128xf32>
    %76 = arith.mulf %75, %74 : vector<8x128xf32>
    %cst_36 = arith.constant 0.707106769 : f32
    %77 = vector.broadcast %cst_36 : f32 to vector<8x128xf32>
    %78 = arith.mulf %74, %77 : vector<8x128xf32>
    %79 = math.erf %78 : vector<8x128xf32>
    %cst_37 = arith.constant 1.000000e+00 : f32
    %80 = vector.broadcast %cst_37 : f32 to vector<8x128xf32>
    %81 = arith.addf %80, %79 : vector<8x128xf32>
    %82 = arith.mulf %76, %81 : vector<8x128xf32>
    %c0_38 = arith.constant 0 : index
    %c0_39 = arith.constant 0 : index
    %83 = vector.load %arg10[%c0_38, %c0_39] : memref<128x128xf32, #tpu.memory_space<vmem>>, vector<128x128xf32>
    %cst_40 = arith.constant dense<0.000000e+00> : vector<8x128xf32>
    %84 = tpu.matmul %82, %83, %cst_40 {dimension_numbers = #tpu.dot_dimension_numbers<[1], [0], [0], [1], [0, 0, 1, 1], [], []>} : vector<8x128xf32>, vector<128x128xf32>, vector<8x128xf32> -> vector<8x128xf32>
    %c0_41 = arith.constant 0 : index
    %c0_42 = arith.constant 0 : index
    %85 = vector.load %arg11[%c0_41, %c0_42] : memref<1x128xf32, #tpu.memory_space<vmem>>, vector<1x128xf32>
    %86 = vector.broadcast %85 : vector<1x128xf32> to vector<8x128xf32>
    %87 = arith.addf %84, %86 : vector<8x128xf32>
    %c0_43 = arith.constant 0 : index
    %c0_44 = arith.constant 0 : index
    %88 = vector.load %arg12[%c0_43, %c0_44] : memref<1x128xf32, #tpu.memory_space<vmem>>, vector<1x128xf32>
    %c0_45 = arith.constant 0 : index
    %c0_46 = arith.constant 0 : index
    %89 = vector.load %arg13[%c0_45, %c0_46] : memref<1x128xf32, #tpu.memory_space<vmem>>, vector<1x128xf32>
    %cst_47 = arith.constant dense<0.000000e+00> : vector<8xf32>
    %90 = vector.multi_reduction <add>, %87, %cst_47 [1] : vector<8x128xf32> to vector<8xf32>
    %91 = vector.shape_cast %90 : vector<8xf32> to vector<8x1xf32>
    %cst_48 = arith.constant 1.250000e-01 : f32
    %92 = vector.broadcast %cst_48 : f32 to vector<8x1xf32>
    %93 = arith.mulf %91, %92 : vector<8x1xf32>
    %94 = vector.broadcast %93 : vector<8x1xf32> to vector<8x128xf32>
    %95 = arith.subf %87, %94 : vector<8x128xf32>
    %96 = arith.mulf %95, %95 : vector<8x128xf32>
    %cst_49 = arith.constant dense<0.000000e+00> : vector<8xf32>
    %97 = vector.multi_reduction <add>, %96, %cst_49 [1] : vector<8x128xf32> to vector<8xf32>
    %98 = vector.shape_cast %97 : vector<8xf32> to vector<8x1xf32>
    %99 = arith.mulf %93, %93 : vector<8x1xf32>
    %cst_50 = arith.constant 1.200000e+02 : f32
    %100 = vector.broadcast %cst_50 : f32 to vector<8x1xf32>
    %101 = arith.mulf %100, %99 : vector<8x1xf32>
    %102 = arith.subf %98, %101 : vector<8x1xf32>
    %cst_51 = arith.constant 1.250000e-01 : f32
    %103 = vector.broadcast %cst_51 : f32 to vector<8x1xf32>
    %104 = arith.mulf %102, %103 : vector<8x1xf32>
    %cst_52 = arith.constant 0.000000e+00 : f32
    %105 = vector.broadcast %cst_52 : f32 to vector<8x1xf32>
    %106 = arith.maximumf %104, %105 : vector<8x1xf32>
    %cst_53 = arith.constant 9.99999974E-6 : f32
    %107 = vector.broadcast %cst_53 : f32 to vector<8x1xf32>
    %108 = arith.addf %106, %107 : vector<8x1xf32>
    %109 = math.rsqrt %108 : vector<8x1xf32>
    %110 = vector.broadcast %109 : vector<8x1xf32> to vector<8x128xf32>
    %111 = arith.mulf %95, %110 : vector<8x128xf32>
    %112 = vector.broadcast %88 : vector<1x128xf32> to vector<8x128xf32>
    %113 = arith.mulf %111, %112 : vector<8x128xf32>
    %114 = vector.broadcast %89 : vector<1x128xf32> to vector<8x128xf32>
    %115 = arith.addf %113, %114 : vector<8x128xf32>
    %c0_54 = arith.constant 0 : index
    %c0_55 = arith.constant 0 : index
    %116 = vector.load %arg14[%c0_54, %c0_55] : memref<8x128xf32, #tpu.memory_space<vmem>>, vector<8x128xf32>
    tpu.vector_store %arg14[%c0_54, %c0_55], %115 {strides = array<i32>} : memref<8x128xf32, #tpu.memory_space<vmem>>, vector<8x128xf32>,
    return
  }
  func.func @transform_0(%arg0: i32) -> (i32, i32) {
    %c0_i32 = arith.constant 0 : i32
    %c0_i32_0 = arith.constant 0 : i32
    return %arg0, %c0_i32 : i32, i32
  }
  func.func @transform_1(%arg0: i32) -> (i32, i32) {
    %c0_i32 = arith.constant 0 : i32
    %c0_i32_0 = arith.constant 0 : i32
    %c0_i32_1 = arith.constant 0 : i32
    return %c0_i32, %c0_i32_0 : i32, i32
  }
  func.func @transform_2(%arg0: i32) -> (i32, i32) {
    %c0_i32 = arith.constant 0 : i32
    %c0_i32_0 = arith.constant 0 : i32
    %c0_i32_1 = arith.constant 0 : i32
    return %c0_i32, %c0_i32_0 : i32, i32
  }
  func.func @transform_3(%arg0: i32) -> (i32, i32) {
    %c0_i32 = arith.constant 0 : i32
    %c0_i32_0 = arith.constant 0 : i32
    %c0_i32_1 = arith.constant 0 : i32
    return %c0_i32, %c0_i32_0 : i32, i32
  }
  func.func @transform_4(%arg0: i32) -> (i32, i32) {
    %c0_i32 = arith.constant 0 : i32
    %c0_i32_0 = arith.constant 0 : i32
    %c0_i32_1 = arith.constant 0 : i32
    return %c0_i32, %c0_i32_0 : i32, i32
  }
  func.func @transform_5(%arg0: i32) -> (i32, i32) {
    %c0_i32 = arith.constant 0 : i32
    %c0_i32_0 = arith.constant 0 : i32
    %c0_i32_1 = arith.constant 0 : i32
    return %c0_i32, %c0_i32_0 : i32, i32
  }
  func.func @transform_6(%arg0: i32) -> (i32, i32) {
    %c0_i32 = arith.constant 0 : i32
    %c0_i32_0 = arith.constant 0 : i32
    %c0_i32_1 = arith.constant 0 : i32
    return %c0_i32, %c0_i32_0 : i32, i32
  }
  func.func @transform_7(%arg0: i32) -> (i32, i32) {
    %c0_i32 = arith.constant 0 : i32
    %c0_i32_0 = arith.constant 0 : i32
    %c0_i32_1 = arith.constant 0 : i32
    return %c0_i32, %c0_i32_0 : i32, i32
  }
  func.func @transform_8(%arg0: i32) -> (i32, i32) {
    %c0_i32 = arith.constant 0 : i32
    %c0_i32_0 = arith.constant 0 : i32
    %c0_i32_1 = arith.constant 0 : i32
    return %c0_i32, %c0_i32_0 : i32, i32
  }
  func.func @transform_9(%arg0: i32) -> (i32, i32) {
    %c0_i32 = arith.constant 0 : i32
    %c0_i32_0 = arith.constant 0 : i32
    %c0_i32_1 = arith.constant 0 : i32
    return %c0_i32, %c0_i32_0 : i32, i32
  }
  func.func @transform_10(%arg0: i32) -> (i32, i32) {
    %c0_i32 = arith.constant 0 : i32
    %c0_i32_0 = arith.constant 0 : i32
    %c0_i32_1 = arith.constant 0 : i32
    return %c0_i32, %c0_i32_0 : i32, i32
  }
  func.func @transform_11(%arg0: i32) -> (i32, i32) {
    %c0_i32 = arith.constant 0 : i32
    %c0_i32_0 = arith.constant 0 : i32
    %c0_i32_1 = arith.constant 0 : i32
    return %c0_i32, %c0_i32_0 : i32, i32
  }
  func.func @transform_12(%arg0: i32) -> (i32, i32) {
    %c0_i32 = arith.constant 0 : i32
    %c0_i32_0 = arith.constant 0 : i32
    %c0_i32_1 = arith.constant 0 : i32
    return %c0_i32, %c0_i32_0 : i32, i32
  }
  func.func @transform_13(%arg0: i32) -> (i32, i32) {
    %c0_i32 = arith.constant 0 : i32
    %c0_i32_0 = arith.constant 0 : i32
    return %arg0, %c0_i32 : i32, i32
  }
}

</mosaic_0001>

<bundles_post_ra>
// kernel: tpu_custom_call.1
= control target key start
LH: loop header
LB: loop body
LE: loop exit
PB: predicated region body
PF: predicated region fallthrough
CT: control target
= control target key end

     0   :  { %s1938_s0 = inlined_call_operand.hbm [shape: f32[16,128], index: 0, kind: input, shape index: {}]   ;;  %s1939_s1 = inlined_call_operand.hbm [shape: f32[128,128], index: 1, kind: input, shape index: {}]   ;;  %s1940_s2 = inlined_call_operand.vmem [shape: f32[1,128], index: 2, kind: input, shape index: {}]   ;;  %s1941_s3 = inlined_call_operand.vmem [shape: f32[1,128], index: 3, kind: input, shape index: {}]   ;;  %s1942_s4 = inlined_call_operand.vmem [shape: f32[1,128], index: 4, kind: input, shape index: {}]   ;;  %s1943_s5 = inlined_call_operand.hbm [shape: f32[128,128], index: 5, kind: input, shape index: {}]   ;;  %s1944_s6 = inlined_call_operand.vmem [shape: f32[1,128], index: 6, kind: input, shape index: {}]   ;;  %s1945_s7 = inlined_call_operand.vmem [shape: f32[1,128], index: 7, kind: input, shape index: {}]   ;;  %s1946_s8 = inlined_call_operand.vmem [shape: f32[1,128], index: 8, kind: input, shape index: {}]   ;;  %s1947_s9 = inlined_call_operand.hbm [shape: f32[128,128], index: 9, kind: input, shape index: {}]   ;;  %s1948_s10 = inlined_call_operand.vmem [shape: f32[1,128], index: 10, kind: input, shape index: {}]   ;;  %s1949_s11 = inlined_call_operand.vmem [shape: f32[1,128], index: 11, kind: input, shape index: {}]   ;;  %s1950_s12 = inlined_call_operand.vmem [shape: f32[1,128], index: 12, kind: input, shape index: {}]   ;;  %s1951_s13 = inlined_call_operand.hbm [shape: f32[16,128], index: 13, kind: output, shape index: {}]  }
   0x1   :  { %1958 = sst [smem:[#allocation17_spill]] %s1946_s8 }
   0x2   :  { %1959 = sst [smem:[#allocation18_spill]] %s1948_s10 }
   0x3   :  { %1960 = sst [smem:[#allocation19_spill]] %s1949_s11 }
   0x4   :  { %1961 = sst [smem:[#allocation20_spill]] %s1950_s12 }
   0x5   :  { %1962 = sst [smem:[#allocation21_spill]] %s1951_s13 }
   0x6   :  { %18 = vsyncpa [#allocation3], 0 }
   0x7   :  { %20 = vsyncpa [#allocation3 + $0x1], 0 }
   0x8   :  { %21 = vsyncpa [#allocation6], 0 }
   0x9   :  { %22 = vsyncpa [#allocation9], 0 }
   0xa   :  { %23 = vsyncpa [#allocation4], 0 }
   0xb   :  { %25 = vsyncpa [#allocation4 + $0x1], 0  ;;  %s1614_s25 = smov 0   ;;  %s1616_s26 = smov 0  }
   0xc   :  { %s1618_s27 = smov 0   ;;  %s1620_s28 = smov 0  }
   0xd LB: > { %1963 = sst [smem:[#allocation15_spill]] %s1520_s25  ;;  %s1635_s29 = sadd.s32 4294967295, %s1532_s28   ;;  %s1532_s28 = sphi %s1620_s28, %s1991_s28   ;;  %s1528_s27 = sphi %s1618_s27, %s1990_s27   ;;  %s1524_s26 = sphi %s1616_s26, %s1989_s26   ;;  %s1520_s25 = sphi %s1614_s25, %s1988_s25  }
   0xe   : > { %s997_s30 = sadd.s32 4294967294, %s1532_s28   ;;  %p51_p0 = scmp.ne.s32.totalorder %s1524_s26, %s1520_s25 }
   0xf   : > { %p1955_p1 = scmp.eq.s32.totalorder %s1635_s29, 0  ;;  %p333_p3 = scmp.eq.s32.totalorder %s997_s30, 1 }
  0x10   : > { %p998_p5 = scmp.ge.s32.totalorder %s1532_s28, 1  ;;  %p340_p7 = scmp.lt.s32.totalorder %s1532_s28, 3 }
  0x11   : > { %p1644_p4 = por %p1955_p1, %p51_p0  ;;  %p1649_p6 = por %p333_p3, %p51_p0 }
  0x12   : > { %p1654_p8 = pnand %p998_p5, %p340_p7  ;;  %s1534_s17 = smov [#allocation5]  }
  0x13   : > { %s1964_s14 = scalar_select %p1644_p4, 1, 0 }
  0x14   : > { %s1965_s15 = scalar_select %p1649_p6, 1, 0 }
  0x15   : > { %s1967_s16 = scalar_select %p1654_p8, 1, 0 }
  0x16   : > { %1966 = sst [smem:[#allocation16_spill]] %s1965_s15  ;;  %s352_s18 = sshll.u32 %s1534_s17, 4  ;;  %s1658_s18 = int_to_ptr.vmem [resolvable:$true] %s352_s18 }
  0x17   : > { %p1268_p9 = pneg %p1654_p8  ;;  %s1535_s20 = smov [#allocation7]  }
  0x18   : > { %s374_s21 = sshll.u32 %s1535_s20, 4  ;;  %s1536_s22 = smov [#allocation8]   ;;  %s1669_s21 = int_to_ptr.vmem [resolvable:$true] %s374_s21 }
  0x19   : > { %p1665_p11 = pnand %p1268_p9, %p1955_p1  ;;  %s1671_s23 = sshll.u32 %s1536_s22, 4  ;;  %s397_s23 = int_to_ptr.vmem [resolvable:$true] %s1671_s23 }
  0x1a   : > { %s1344_s17 = scalar_lea.hbm %s1939_s1, 2048 }
  0x1b   : > { %p1345_p12 = scmp.ne.s32.totalorder %s1939_s1, %s1344_s17  ;;  %p1681_p13 = pneg %p1665_p11 }
  0x1c   : > { %p1351_p5 = scmp.lt.u32.totalorder %s1344_s17, %s1939_s1 }
  0x1d   : > { %p1347_p0 = pnand %p1681_p13, %p1345_p12 }
  0x1f   : > { %p1348_p3 = pneg %p1347_p0 }
  0x21   : > { %p1353_p7 = pnand %p1351_p5, %p1348_p3 }
  0x23   : > { %1356 = shalt.err (!%p1353_p7)
}
  0x24   : > { %s1357_s25 = scalar_lea.vmem %s1658_s18, 2048  ;;  %p1365_p2 = scmp.lt.s32.totalorder %s1658_s18, %s1658_s18 }
  0x25   : > { %p1358_p9 = scmp.ne.s32.totalorder %s1658_s18, %s1357_s25  ;;  %p1366_p6 = scmp.lt.s32.totalorder %s1357_s25, %s1357_s25 }
  0x27   : > { %p1360_p10 = pnand %p1358_p9, %p1681_p13  ;;  %p1367_p12 = por %p1366_p6, %p1365_p2 }
  0x29   : > { %p1361_p1 = pneg %p1360_p10 }
  0x2b   : > { %p1368_p0 = pnand %p1367_p12, %p1361_p1 }
  0x2d   : > { %1371 = shalt.err (!%p1368_p0)
}
  0x2e   : > { %s1537_s15 = smov 128   ;;  %s1538_s24 = smov 8  }
  0x2f   : > { %1271 = dma.hbm_to_vmem [thread:$0]  (!%p1665_p11), %s1939_s1, 2048, %s1658_s18, [#allocation6], %s1537_s15, %s1537_s15, %s1538_s24  }
  0x30   : > { %s1372_s25 = scalar_lea.hbm %s1943_s5, 2048 }
  0x31   : > { %p1373_p1 = scmp.ne.s32.totalorder %s1943_s5, %s1372_s25  ;;  %p1379_p10 = scmp.lt.u32.totalorder %s1372_s25, %s1943_s5 }
  0x33   : > { %p1375_p2 = pnand %p1373_p1, %p1681_p13 }
  0x35   : > { %p1376_p6 = pneg %p1375_p2 }
  0x37   : > { %p1381_p3 = pnand %p1379_p10, %p1376_p6 }
  0x39   : > { %1384 = shalt.err (!%p1381_p3)
}
  0x3a   : > { %s1385_s18 = scalar_lea.vmem %s1669_s21, 2048  ;;  %p1393_p12 = scmp.lt.s32.totalorder %s1669_s21, %s1669_s21 }
  0x3b   : > { %p1386_p5 = scmp.ne.s32.totalorder %s1669_s21, %s1385_s18  ;;  %p1394_p0 = scmp.lt.s32.totalorder %s1385_s18, %s1385_s18 }
  0x3d   : > { %p1388_p7 = pnand %p1386_p5, %p1681_p13  ;;  %p1395_p1 = por %p1394_p0, %p1393_p12 }
  0x3f   : > { %p1389_p9 = pneg %p1388_p7 }
  0x41   : > { %p1396_p2 = pnand %p1395_p1, %p1389_p9 }
  0x43   : > { %1399 = shalt.err (!%p1396_p2)
}
  0x44   : > { %1274 = dma.hbm_to_vmem [thread:$0]  (!%p1665_p11), %s1943_s5, 2048, %s1669_s21, [#allocation6], %s1537_s15, %s1537_s15, %s1538_s24  }
  0x45   : > { %s1400_s30 = scalar_lea.hbm %s1947_s9, 2048 }
  0x46   : > { %p1401_p6 = scmp.ne.s32.totalorder %s1947_s9, %s1400_s30  ;;  %p1407_p5 = scmp.lt.u32.totalorder %s1400_s30, %s1947_s9 }
  0x48   : > { %p1403_p10 = pnand %p1401_p6, %p1681_p13 }
  0x4a   : > { %p1404_p3 = pneg %p1403_p10 }
  0x4c   : > { %p1409_p7 = pnand %p1407_p5, %p1404_p3 }
  0x4e   : > { %1412 = shalt.err (!%p1409_p7)
}
  0x4f   : > { %s1413_s18 = scalar_lea.vmem %s397_s23, 2048  ;;  %p1421_p1 = scmp.lt.s32.totalorder %s397_s23, %s397_s23 }
  0x50   : > { %p1414_p9 = scmp.ne.s32.totalorder %s397_s23, %s1413_s18  ;;  %p1422_p2 = scmp.lt.s32.totalorder %s1413_s18, %s1413_s18 }
  0x52   : > { %p1416_p12 = pnand %p1414_p9, %p1681_p13  ;;  %p1423_p4 = por %p1422_p2, %p1421_p1 }
  0x54   : > { %p1417_p0 = pneg %p1416_p12 }
  0x56   : > { %p1424_p8 = pnand %p1423_p4, %p1417_p0 }
  0x58   : > { %1427 = shalt.err (!%p1424_p8)
}
  0x59   : > { %1277 = dma.hbm_to_vmem [thread:$0]  (!%p1665_p11), %s1947_s9, 2048, %s397_s23, [#allocation9], %s1537_s15, %s1537_s15, %s1538_s24  }
  0x5a   : > { %s1754_s13 = sadd.s32 1, %s1532_s28   ;;  %s38_s10 = sadd.s32 1, %s1528_s27 }
  0x5b   : > { %s35_s19 = ssub.s32 %s1532_s28, %s1754_s13  ;;  %p45_p8 = scmp.ne.s32.totalorder %s1528_s27, %s1524_s26 }
  0x5c   : > { %p36_p4 = scmp.eq.s32.totalorder %s35_s19, 0  ;;  %p46_p13 = scmp.eq.s32.totalorder %s1532_s28, 0 }
  0x5d   : > { %p1289_p6 = scmp.lt.s32.totalorder %s1532_s28, 2  ;;  %p1970_p3 = scmp.eq.s32.totalorder %s1635_s29, 1 }
  0x5e   : > { %s1764_s11 = scalar_select %p36_p4, %s1528_s27, %s38_s10  }
  0x5f   : > { %p47_p10 = por %p46_p13, %p45_p8  ;;  %p1768_p5 = por %p1970_p3, %p45_p8 }
  0x60   : > { %s419_s30 = sand.u32 1, %s1528_s27   ;;  %s1004_s17 = sshll.u32 %s1532_s28, 7 }
  0x61   : > { %s1003_s23 = sshll.u32 %s419_s30, 3  ;;  %s1777_s20 = scalar_lea.hbm %s1938_s0, %s1004_s17 }
  0x62   : > { %s423_s22 = scalar_lea.vmem [#allocation2], %s1003_s23  ;;  %p1779_p11 = pnand %p1289_p6, %p47_p10 }
  0x63   : > { %s430_s25 = sshll.u32 %s423_s22, 4  ;;  %s420_s21 = scalar_lea.sflag [#allocation3], %s419_s30  ;;  %s1783_s25 = int_to_ptr.vmem [resolvable:$true] %s430_s25 }
  0x64   : > { %s1428_s8 = scalar_lea.hbm %s1777_s20, 128  ;;  %p1430_p9 = pneg %p1779_p11 }
  0x65   : > { %p1429_p7 = scmp.ne.s32.totalorder %s1777_s20, %s1428_s8  ;;  %s1433_s17 = scalar_lea.hbm %s1938_s0, 256 }
  0x66   : > { %p1434_p1 = scmp.lt.u32.totalorder %s1777_s20, %s1938_s0  ;;  %p1435_p2 = scmp.lt.u32.totalorder %s1433_s17, %s1428_s8 }
  0x67   : > { %p1431_p12 = pnand %p1430_p9, %p1429_p7  ;;  %p1437_p8 = scmp.lt.u32.totalorder %s1428_s8, %s1777_s20 }
  0x68   : > { %p1436_p4 = por %p1435_p2, %p1434_p1 }
  0x69   : > { %p1432_p0 = pneg %p1431_p12 }
  0x6a   : > { %p1438_p13 = por %p1437_p8, %p1436_p4 }
  0x6c   : > { %p1439_p6 = pnand %p1438_p13, %p1432_p0 }
  0x6e   : > { %1442 = shalt.err (!%p1439_p6)
}
  0x6f   : > { %s1443_s30 = scalar_lea.vmem %s1783_s25, 128  ;;  %s1539_s24 = smov [#allocation2]  }
  0x70   : > { %p1444_p10 = scmp.ne.s32.totalorder %s1783_s25, %s1443_s30  ;;  %s1448_s22 = sshll.u32 %s1539_s24, 4  ;;  %s1449_s22 = int_to_ptr.vmem [resolvable:$false] %s1448_s22 }
  0x71   : > { %s1450_s19 = scalar_lea.vmem %s1449_s22, 256  ;;  %p1451_p12 = scmp.lt.s32.totalorder %s1783_s25, %s1449_s22 }
  0x72   : > { %p1446_p3 = pnand %p1444_p10, %p1430_p9  ;;  %p1452_p1 = scmp.lt.s32.totalorder %s1450_s19, %s1443_s30 }
  0x74   : > { %p1447_p7 = pneg %p1446_p3  ;;  %p1453_p2 = por %p1452_p1, %p1451_p12 }
  0x76   : > { %p1454_p4 = pnand %p1453_p2, %p1447_p7 }
  0x78   : > { %1457 = shalt.err (!%p1454_p4)
}
  0x79   : > { %1281 = dma.hbm_to_vmem [thread:$0]  (!%p1779_p11), %s1777_s20, 128, %s1783_s25, %s420_s21  }
  0x7a   : > { %p1973_p0 = scmp.ne.s32.totalorder %s1967_s16, 0 }
  0x7b   : > { %s1813_s8 = sand.u32 (!%p1973_p0), 1, %s1524_s26   ;;  %p1974_p9 = scmp.ne.s32.totalorder (!%p1973_p0), %s1964_s14, 0 }
  0x7c   : > { %439 = sbr.rel (%p1973_p0) target bundleno = 1809 (0x711), region = 72  ;;  %s1006_s10 = sshll.u32 (!%p1973_p0), %s1813_s8, 3 }
  0x7d   : > { %s442_s17 = scalar_lea.sflag (!%p1973_p0), [#allocation3], %s1813_s8  ;;  %s1819_s23 = scalar_lea.vmem (!%p1973_p0), [#allocation2], %s1006_s10 }
  0x83   : > { %1503 = dma.done.wait (%p1974_p9), %s442_s17, 128  }
  0x84   : > { %1505 = vsyncadd (%p1974_p9), %s442_s17, 4294967168  ;;  %p1975_p11 = scmp.eq.s32.totalorder %s1635_s29, 0 }
  0x86   : > { %1507 = dma.done.wait (%p1975_p11), [#allocation6], 4096   ;;  %p1976_p8 = pmov %p1975_p11 }
  0x88   : > { %1509 = vsyncadd (%p1976_p8), [#allocation6], 4294963200  ;;  %p1977_p13 = pmov %p1976_p8 }
  0x89   : > { %p1978_p6 = pmov %p1976_p8 }
  0x8a   : > { %1511 = dma.done.wait (%p1977_p13), [#allocation9], 2048  }
  0x8b   : > { %1513 = vsyncadd (%p1978_p6), [#allocation9], 4294965248  ;;  %v1540_v0 = vmov 0.0|0.0   ;;  %vm1541_vm0 = vmmov 0   ;;  %v1542_v1 = vmov 0.0   ;;  %v501_v2 = vld [vmem:[#allocation5] sm:$0xff] }
  0x8c   : > { %1180 = vmatprep.subr.bf16.mxu0 %v1540_v0  ;;  %1107 = vmatprep.mubr.msk.f32.mxu0 %vm1541_vm0, %v1542_v1  ;;  %v502_v3 = vld [vmem:[#allocation5 + $0x8] sm:$0xff]  ;;  %v503_v4 = vld [vmem:[#allocation5 + $0x10] sm:$0xff]  ;;  %v504_v6 = vld [vmem:[#allocation5 + $0x18] sm:$0xff]  ;;  %s1980_s20 = sld [smem:[#allocation18_spill]]  ;;  %s1981_s21 = sld [smem:[#allocation19_spill]] }
  0x8d   : > { %1204 = vmatprep.subr.bf16.mxu1 %v1540_v0  ;;  %1142 = vmatprep.mubr.msk.f32.mxu1 %vm1541_vm0, %v1542_v1  ;;  %v1181_v5 = vpack.c.bf16 %v502_v3, %v501_v2  ;;  %v1184_v7 = vpack.c.bf16 %v504_v6, %v503_v4  ;;  %v505_v8 = vld [vmem:[#allocation5 + $0x20] sm:$0xff]  ;;  %v506_v9 = vld [vmem:[#allocation5 + $0x28] sm:$0xff]  ;;  %v507_v11 = vld [vmem:[#allocation5 + $0x30] sm:$0xff]  ;;  %s1982_s24 = sld [smem:[#allocation20_spill]]  ;;  %s1021_s22 = sshll.u32 %s1635_s29, 7 }
  0x8e   : > { %v1187_v10 = vpack.c.bf16 %v506_v9, %v505_v8  ;;  %v508_v12 = vld [vmem:[#allocation5 + $0x38] sm:$0xff]  ;;  %v509_v14 = vld [vmem:[#allocation5 + $0x40] sm:$0xff]  ;;  %v510_v15 = vld [vmem:[#allocation5 + $0x48] sm:$0xff]  ;;  %s499_s19 = scalar_lea.vmem [#allocation10], %s1006_s10  ;;  %s1983_s16 = sld [smem:[#allocation21_spill]] }
  0x8f   : > { %1182 = vmatpush3.bf16.msra.mxu0 %v1181_v5  ;;  %v1190_v13 = vpack.c.bf16 %v508_v12, %v507_v11  ;;  %v1193_v16 = vpack.c.bf16 %v510_v15, %v509_v14  ;;  %v511_v17 = vld [vmem:[#allocation5 + $0x50] sm:$0xff]  ;;  %v512_v18 = vld [vmem:[#allocation5 + $0x58] sm:$0xff]  ;;  %v513_v20 = vld [vmem:[#allocation5 + $0x60] sm:$0xff]  ;;  %s898_s17 = sshll.u32 %s499_s19, 4  ;;  %s885_s25 = scalar_lea.sflag [#allocation4], %s1813_s8  ;;  %s1896_s17 = int_to_ptr.vmem [resolvable:$true] %s898_s17 }
  0x90   : > { %1183 = vmatprep.subr.bf16.mxu0 %v1540_v0  ;;  %v1196_v19 = vpack.c.bf16 %v512_v18, %v511_v17  ;;  %v514_v21 = vld [vmem:[#allocation5 + $0x68] sm:$0xff]  ;;  %v515_v23 = vld [vmem:[#allocation5 + $0x70] sm:$0xff]  ;;  %v516_v24 = vld [vmem:[#allocation5 + $0x78] sm:$0xff]  ;;  %s1458_s18 = scalar_lea.vmem %s1896_s17, 128  ;;  %s1543_s29 = smov [#allocation10]  }
  0x91   : > { %v1199_v22 = vpack.c.bf16 %v514_v21, %v513_v20  ;;  %v1202_v25 = vpack.c.bf16 %v516_v24, %v515_v23  ;;  %v500_v26 = vld [vmem:[%s1819_s23] sm:$0xff]  ;;  %v630_v35 = vld [vmem:[#allocation7] sm:$0xff]  ;;  %v631_v36 = vld [vmem:[#allocation7 + $0x8] sm:$0xff]  ;;  %s1979_s23 = sld [smem:[#allocation17_spill]]  ;;  %p1459_p10 = scmp.ne.s32.totalorder %s1896_s17, %s1458_s18 }
  0x92   : > { %v1011_v27 = vld [vmem:[%s1940_s2] ss:$0 sm:$0xff]  ;;  %v1205_v38 = vpack.c.bf16 %v631_v36, %v630_v35  ;;  %v633_v39 = vld [vmem:[#allocation7 + $0x18] sm:$0xff]  ;;  %v634_v41 = vld [vmem:[#allocation7 + $0x20] sm:$0xff]  ;;  %s1462_s10 = sshll.u32 %s1543_s29, 4  ;;  %s1463_s10 = int_to_ptr.vmem [resolvable:$false] %s1462_s10 }
  0x93   : > { %1185 = vmatpush3.bf16.msra.mxu0 %v1184_v7  ;;  %v632_v37 = vld [vmem:[#allocation7 + $0x10] sm:$0xff]  ;;  %v635_v42 = vld [vmem:[#allocation7 + $0x28] sm:$0xff]  ;;  %v637_v45 = vld [vmem:[#allocation7 + $0x38] sm:$0xff]  ;;  %p1460_p3 = pnand %p1459_p10, %p1768_p5  ;;  %p1465_p12 = scmp.lt.s32.totalorder %s1896_s17, %s1463_s10 }
  0x94   : > { %1186 = vmatprep.subr.bf16.mxu0 %v1540_v0  ;;  %1206 = vmatpush3.bf16.msra.mxu1 %v1205_v38  ;;  %v1208_v40 = vpack.c.bf16 %v633_v39, %v632_v37  ;;  %v1211_v43 = vpack.c.bf16 %v635_v42, %v634_v41  ;;  %v636_v44 = vld [vmem:[#allocation7 + $0x30] sm:$0xff]  ;;  %v638_v47 = vld [vmem:[#allocation7 + $0x40] sm:$0xff]  ;;  %v639_v48 = vld [vmem:[#allocation7 + $0x48] sm:$0xff] }
  0x95   : > { %1207 = vmatprep.subr.bf16.mxu1 %v1540_v0  ;;  %v1214_v46 = vpack.c.bf16 %v637_v45, %v636_v44  ;;  %v1217_v49 = vpack.c.bf16 %v639_v48, %v638_v47  ;;  %v640_v50 = vld [vmem:[#allocation7 + $0x50] sm:$0xff]  ;;  %v641_v51 = vld [vmem:[#allocation7 + $0x58] sm:$0xff]  ;;  %v642_v53 = vld [vmem:[#allocation7 + $0x60] sm:$0xff]  ;;  %p1461_p7 = pneg %p1460_p3 }
  0x96   : > { %v1220_v52 = vpack.c.bf16 %v641_v51, %v640_v50  ;;  %v643_v54 = vld [vmem:[#allocation7 + $0x68] sm:$0xff]  ;;  %v644_v56 = vld [vmem:[#allocation7 + $0x70] sm:$0xff]  ;;  %v645_v57 = vld [vmem:[#allocation7 + $0x78] sm:$0xff] }
  0x97   : > { %1188 = vmatpush3.bf16.msra.mxu0 %v1187_v10  ;;  %v1223_v55 = vpack.c.bf16 %v643_v54, %v642_v53  ;;  %v1226_v58 = vpack.c.bf16 %v645_v57, %v644_v56  ;;  %v1012_v4 = vld [vmem:[%s1941_s3] ss:$0 sm:$0xff]  ;;  %v760_v23 = vld [vmem:[#allocation8 + $0x8] sm:$0xff]  ;;  %v770_v38 = vld [vmem:[#allocation8 + $0x58] sm:$0xff] }
  0x98   : > { %1189 = vmatprep.subr.bf16.mxu0 %v1540_v0  ;;  %1209 = vmatpush3.bf16.msra.mxu1 %v1208_v40  ;;  %v1013_v6 = vld [vmem:[%s1942_s4] ss:$0 sm:$0xff]  ;;  %v768_v35 = vld [vmem:[#allocation8 + $0x48] sm:$0xff]  ;;  %v771_v40 = vld [vmem:[#allocation8 + $0x60] sm:$0xff] }
  0x99   : > { %1210 = vmatprep.subr.bf16.mxu1 %v1540_v0  ;;  %v1014_v14 = vld [vmem:[%s1944_s6] ss:$0 sm:$0xff]  ;;  %v772_v41 = vld [vmem:[#allocation8 + $0x68] sm:$0xff]  ;;  %v774_v44 = vld [vmem:[#allocation8 + $0x78] sm:$0xff] }
  0x9a   : > { %v769_v37 = vld [vmem:[#allocation8 + $0x50] sm:$0xff]  ;;  %v1247_v42 = vpack.c.bf16 %v772_v41, %v771_v40 }
  0x9b   : > { %1191 = vmatpush3.bf16.msra.mxu0 %v1190_v13  ;;  %v1244_v39 = vpack.c.bf16 %v770_v38, %v769_v37  ;;  %v1015_v54 = vld [vmem:[%s1945_s7] ss:$0 sm:$0xff] }
  0x9c   : > { %1192 = vmatprep.subr.bf16.mxu0 %v1540_v0  ;;  %1212 = vmatpush3.bf16.msra.mxu1 %v1211_v43  ;;  %v773_v43 = vld [vmem:[#allocation8 + $0x70] sm:$0xff] }
  0x9d   : > { %1213 = vmatprep.subr.bf16.mxu1 %v1540_v0  ;;  %v1250_v45 = vpack.c.bf16 %v774_v44, %v773_v43  ;;  %v1016_v56 = vld [vmem:[%s1979_s23] ss:$0 sm:$0xff] }
  0x9f   : > { %1194 = vmatpush3.bf16.msra.mxu0 %v1193_v16 }
  0xa0   : > { %1195 = vmatprep.subr.bf16.mxu0 %v1540_v0  ;;  %1215 = vmatpush3.bf16.msra.mxu1 %v1214_v46 }
  0xa1   : > { %1216 = vmatprep.subr.bf16.mxu1 %v1540_v0 }
  0xa3   : > { %1197 = vmatpush3.bf16.msra.mxu0 %v1196_v19 }
  0xa4   : > { %1198 = vmatprep.subr.bf16.mxu0 %v1540_v0  ;;  %1218 = vmatpush3.bf16.msra.mxu1 %v1217_v49 }
  0xa5   : > { %1219 = vmatprep.subr.bf16.mxu1 %v1540_v0 }
  0xa7   : > { %1200 = vmatpush3.bf16.msra.mxu0 %v1199_v22  ;;  %v759_v22 = vld [vmem:[#allocation8] sm:$0xff] }
  0xa8   : > { %1201 = vmatprep.subr.bf16.mxu0 %v1540_v0  ;;  %1221 = vmatpush3.bf16.msra.mxu1 %v1220_v52  ;;  %v1229_v24 = vpack.c.bf16 %v760_v23, %v759_v22 }
  0xa9   : > { %1222 = vmatprep.subr.bf16.mxu1 %v1540_v0 }
  0xab   : > { %1203 = vmatpush3.bf16.msra.mxu0 %v1202_v25  ;;  %v761_v25 = vld [vmem:[#allocation8 + $0x10] sm:$0xff] }
  0xac   : > { %1228 = vmatprep.subr.bf16.mxu0 %v1540_v0  ;;  %1224 = vmatpush3.bf16.msra.mxu1 %v1223_v55 }
  0xad   : > { %1225 = vmatprep.subr.bf16.mxu1 %v1540_v0 }
  0xae   : > { %1108 = vmatmul.mubr.f32.vlgmr.msra.gmra.mrb[0].mxu0 %v500_v26  ;;  %v762_v26 = vld [vmem:[#allocation8 + $0x18] sm:$0xff] }
  0xaf   : > { %1177 = vmatprep.mubr.msk.f32.mxu0 %vm1541_vm0, %v1542_v1  ;;  %1230 = vmatpush3.bf16.msra.mxu0 %v1229_v24 }
  0xb0   : > { %1227 = vmatpush3.bf16.msra.mxu1 %v1226_v58  ;;  %1231 = vmatprep.subr.bf16.mxu0 %v1540_v0 }
 0x181   : > { %v590_v28 = vpop.f32.mrb[0].mxu0 }
 0x182   : > { %v591_v29 = vadd.f32 %v1011_v27, %v590_v28  ;;  %v1109_v30 = vpop.f32.mrb[1].mxu0  ;;  %v1232_v27 = vpack.c.bf16 %v762_v26, %v761_v25  ;;  %v763_v28 = vld [vmem:[#allocation8 + $0x20] sm:$0xff] }
 0x184   : > { %596 = vadd.xlane.f32.xlu0 %v591_v29  ;;  %1233 = vmatpush3.bf16.msra.mxu0 %v1232_v27 }
 0x185   : > { %1234 = vmatprep.subr.bf16.mxu0 %v1540_v0 }
 0x211   : > { %v597_v31 = vpop.xlane.xlu0 %596 }
 0x212   : > { %v598_v32 = vmul.f32 0.03125, %v597_v31  ;;  %v765_v31 = vld [vmem:[#allocation8 + $0x30] sm:$0xff] }
 0x214   : > { %v599_v33 = vsub.f32 %v591_v29, %v598_v32  ;;  %v603_v59 = vmul.f32 %v598_v32, %v598_v32  ;;  %v764_v29 = vld [vmem:[#allocation8 + $0x28] sm:$0xff]  ;;  %v766_v32 = vld [vmem:[#allocation8 + $0x38] sm:$0xff] }
 0x215   : > { %v1235_v30 = vpack.c.bf16 %v764_v29, %v763_v28 }
 0x216   : > { %v600_v34 = vmul.f32 %v599_v33, %v599_v33  ;;  %v604_v60 = vmul.f32 96.0, %v603_v59 }
 0x217   : > { %1236 = vmatpush3.bf16.msra.mxu0 %v1235_v30 }
 0x218   : > { %601 = vadd.xlane.f32.xlu0 %v600_v34  ;;  %1237 = vmatprep.subr.bf16.mxu0 %v1540_v0  ;;  %v767_v34 = vld [vmem:[#allocation8 + $0x40] sm:$0xff] }
 0x219   : > { %v1241_v36 = vpack.c.bf16 %v768_v35, %v767_v34 }
 0x2a5   : > { %v602_v61 = vpop.xlane.xlu0 %601 }
 0x2a6   : > { %v605_v62 = vsub.f32 %v602_v61, %v604_v60 }
 0x2a8   : > { %v606_v63 = vmul.f32 0.03125, %v605_v62 }
 0x2aa   : > { %v607_v1 = vmax.f32 %v606_v63, 0.0  ;;  %v1017_v63 = vld [vmem:[%s1980_s20] ss:$0 sm:$0xff]  ;;  %s1894_s20 = scalar_lea.hbm %s1983_s16, %s1021_s22 }
 0x2ac   : > { %v608_v2 = vadd.f32 1e-05, %v607_v1 }
 0x2ae   : > { %1334 = vrsqrt.f32 %v608_v2 }
 0x2b8   : > { %v1335_v3 = vpop.eup %1334 }
 0x2b9   : > { %v610_v5 = vmul.f32 %v1335_v3, %v599_v33  ;;  %v1238_v33 = vpack.c.bf16 %v766_v32, %v765_v31 }
 0x2bb   : > { %v617_v7 = vmul.f32 %v1012_v4, %v610_v5  ;;  %1239 = vmatpush3.bf16.msra.mxu0 %v1238_v33 }
 0x2bc   : > { %1240 = vmatprep.subr.bf16.mxu0 %v1540_v0 }
 0x2bd   : > { %v624_v8 = vadd.f32 %v1013_v6, %v617_v7 }
 0x2bf   : > { %v626_v9 = vmul.f32 0.70710677, %v624_v8  ;;  %v625_v11 = vmul.f32 0.5, %v624_v8  ;;  %1242 = vmatpush3.bf16.msra.mxu0 %v1241_v36 }
 0x2c0   : > { %1243 = vmatprep.subr.bf16.mxu0 %v1540_v0 }
 0x2c1   : > { %1336 = verf.f32 %v626_v9 }
 0x2c3   : > { %1245 = vmatpush3.bf16.msra.mxu0 %v1244_v39 }
 0x2c4   : > { %1246 = vmatprep.subr.bf16.mxu0 %v1540_v0 }
 0x2c7   : > { %1248 = vmatpush3.bf16.msra.mxu0 %v1247_v42 }
 0x2c8   : > { %1249 = vmatprep.subr.bf16.mxu0 %v1540_v0 }
 0x2cb   : > { %v1337_v10 = vpop.eup %1336  ;;  %1251 = vmatpush3.bf16.msra.mxu0 %v1250_v45 }
 0x2cc   : > { %v628_v12 = vadd.f32 1.0, %v1337_v10 }
 0x2ce   : > { %v629_v13 = vmul.f32 %v628_v12, %v625_v11 }
 0x2d0   : > { %1143 = vmatmul.mubr.f32.vlgmr.msra.gmra.mrb[0].mxu1 %v629_v13 }
 0x3a3   : > { %v719_v15 = vpop.f32.mrb[0].mxu1 }
 0x3a4   : > { %v720_v16 = vadd.f32 %v1014_v14, %v719_v15  ;;  %v1144_v17 = vpop.f32.mrb[1].mxu1 }
 0x3a6   : > { %725 = vadd.xlane.f32.xlu1 %v720_v16 }
 0x433   : > { %v726_v18 = vpop.xlane.xlu1 %725 }
 0x434   : > { %v727_v19 = vmul.f32 0.03125, %v726_v18  ;;  %v1019_v18 = vld [vmem:[%s1982_s24] ss:$0 sm:$0xff] }
 0x436   : > { %v728_v20 = vsub.f32 %v720_v16, %v727_v19  ;;  %v732_v46 = vmul.f32 %v727_v19, %v727_v19  ;;  %v1018_v16 = vld [vmem:[%s1981_s21] ss:$0 sm:$0xff]  ;;  %s1464_s21 = scalar_lea.vmem %s1463_s10, 256 }
 0x437   : > { %p1466_p1 = scmp.lt.s32.totalorder %s1464_s21, %s1458_s18 }
 0x438   : > { %v729_v21 = vmul.f32 %v728_v20, %v728_v20  ;;  %v733_v47 = vmul.f32 96.0, %v732_v46 }
 0x439   : > { %p1467_p2 = por %p1466_p1, %p1465_p12 }
 0x43a   : > { %730 = vadd.xlane.f32.xlu1 %v729_v21 }
 0x43b   : > { %p1468_p4 = pnand %p1467_p2, %p1461_p7 }
 0x4c7   : > { %v731_v48 = vpop.xlane.xlu1 %730 }
 0x4c8   : > { %v734_v49 = vsub.f32 %v731_v48, %v733_v47 }
 0x4ca   : > { %v735_v50 = vmul.f32 0.03125, %v734_v49 }
 0x4cc   : > { %v736_v51 = vmax.f32 %v735_v50, 0.0 }
 0x4ce   : > { %v737_v52 = vadd.f32 1e-05, %v736_v51 }
 0x4d0   : > { %1338 = vrsqrt.f32 %v737_v52 }
 0x4da   : > { %v1339_v53 = vpop.eup %1338 }
 0x4db   : > { %v739_v55 = vmul.f32 %v1339_v53, %v728_v20 }
 0x4dd   : > { %v746_v0 = vmul.f32 %v1015_v54, %v739_v55 }
 0x4df   : > { %v753_v57 = vadd.f32 %v1016_v56, %v746_v0 }
 0x4e1   : > { %v755_v58 = vmul.f32 0.70710677, %v753_v57  ;;  %v754_v60 = vmul.f32 0.5, %v753_v57 }
 0x4e3   : > { %1340 = verf.f32 %v755_v58 }
 0x4ed   : > { %v1341_v59 = vpop.eup %1340 }
 0x4ee   : > { %v757_v61 = vadd.f32 1.0, %v1341_v59 }
 0x4f0   : > { %v758_v62 = vmul.f32 %v757_v61, %v754_v60 }
 0x4f2   : > { %1178 = vmatmul.mubr.f32.vlgmr.msra.gmra.mrb[2].mxu0 %v758_v62 }
 0x5c5   : > { %v848_v1 = vpop.f32.mrb[2].mxu0 }
 0x5c6   : > { %v849_v2 = vadd.f32 %v1017_v63, %v848_v1  ;;  %v1179_v3 = vpop.f32.mrb[3].mxu0 }
 0x5c8   : > { %854 = vadd.xlane.f32.xlu0 %v849_v2 }
 0x655   : > { %v855_v4 = vpop.xlane.xlu0 %854 }
 0x656   : > { %v856_v5 = vmul.f32 0.125, %v855_v4 }
 0x658   : > { %v857_v6 = vsub.f32 %v849_v2, %v856_v5  ;;  %v861_v8 = vmul.f32 %v856_v5, %v856_v5 }
 0x65a   : > { %v858_v7 = vmul.f32 %v857_v6, %v857_v6  ;;  %v862_v9 = vmul.f32 120.0, %v861_v8 }
 0x65c   : > { %859 = vadd.xlane.f32.xlu1 %v858_v7 }
 0x6e9   : > { %v860_v10 = vpop.xlane.xlu1 %859 }
 0x6ea   : > { %v863_v11 = vsub.f32 %v860_v10, %v862_v9 }
 0x6ec   : > { %v864_v12 = vmul.f32 0.125, %v863_v11 }
 0x6ee   : > { %v865_v13 = vmax.f32 %v864_v12, 0.0 }
 0x6f0   : > { %v866_v14 = vadd.f32 1e-05, %v865_v13 }
 0x6f2   : > { %1342 = vrsqrt.f32 %v866_v14 }
 0x6fc   : > { %v1343_v15 = vpop.eup %1342 }
 0x6fd   : > { %v868_v17 = vmul.f32 %v1343_v15, %v857_v6 }
 0x6ff   : > { %v875_v19 = vmul.f32 %v1018_v16, %v868_v17 }
 0x701   : > { %v882_v20 = vadd.f32 %v1019_v18, %v875_v19 }
 0x703   : > { %883 = vst [vmem:[%s499_s19] sm:$0xff] %v882_v20 }
 0x704   : > { %1471 = shalt.err (!%p1468_p4)
}
 0x705   : > { %s1472_s8 = scalar_lea.hbm %s1894_s20, 128  ;;  %s1476_s24 = scalar_lea.hbm %s1983_s16, 256 }
 0x706   : > { %p1473_p0 = scmp.ne.s32.totalorder %s1894_s20, %s1472_s8  ;;  %p1477_p8 = scmp.lt.u32.totalorder %s1894_s20, %s1983_s16 }
 0x707   : > { %p1478_p13 = scmp.lt.u32.totalorder %s1476_s24, %s1472_s8  ;;  %p1480_p10 = scmp.lt.u32.totalorder %s1472_s8, %s1894_s20 }
 0x708   : > { %p1474_p9 = pnand %p1473_p0, %p1768_p5 }
 0x709   : > { %p1479_p6 = por %p1478_p13, %p1477_p8 }
 0x70a   : > { %p1475_p11 = pneg %p1474_p9 }
 0x70b   : > { %p1481_p3 = por %p1480_p10, %p1479_p6 }
 0x70d   : > { %p1482_p7 = pnand %p1481_p3, %p1475_p11 }
 0x70f   : > { %1485 = shalt.err (!%p1482_p7)
}
 0x710   : > { %1266 = dma.vmem_to_hbm [thread:$0]  (%p1768_p5), %s1896_s17, 128, %s1894_s20, %s885_s25  }
 0x711 PF: > { %s1984_s23 = sld [smem:[#allocation15_spill]]  ;;  %s1985_s14 = sld [smem:[#allocation16_spill]] }
 0x712   : > { %p1987_p1 = scmp.ge.s32.totalorder %s1532_s28, 2 }
 0x717   : > { %s910_s18 = sand.u32 1, %s1984_s23   ;;  %p1986_p12 = scmp.ne.s32.totalorder %s1985_s14, 0 }
 0x718   : > { %s911_s29 = scalar_lea.sflag [#allocation4], %s910_s18 }
 0x719   : > { %p1283_p2 = pnand %p1987_p1, %p1986_p12 }
 0x71b   : > { %1515 = dma.done.wait (!%p1283_p2), %s911_s29, 128  }
 0x71c   : > { %1517 = vsyncadd (!%p1283_p2), %s911_s29, 4294967168  ;;  %p28_p4 = scmp.ge.s32.totalorder %s1754_s13, 4   ;;  %s1988_s25 = smov %s1524_s26 }
 0x71d   : > { %s1989_s26 = smov %s1528_s27  ;;  %s1990_s27 = smov %s1764_s11 }
 0x71e   : > { %s1991_s28 = smov %s1754_s13  ;;  %30 = sbr.rel (!%p28_p4) target bundleno = 13 (0xd), region = 129 }
 0x725   :  { %916 = vsyncpa [#allocation3], 1 }
 0x726   :  { %918 = vsyncpa [#allocation3 + $0x1], 1 }
 0x727   :  { %919 = vsyncpa [#allocation6], 1 }
 0x728   :  { %920 = vsyncpa [#allocation9], 1 }
 0x729   :  { %921 = vsyncpa [#allocation4], 1 }
 0x72a   :  { %923 = vsyncpa [#allocation4 + $0x1], 1 }

</bundles_post_ra>
